<compile_context>
chip_gen: v5e
topology: v5e:2x2
jax: 0.10.0
libtpu: 0.0.40
codegen_flags: <defaults>
</compile_context>

<pallas_src>
import functools

import jax
import jax.numpy as jnp
from jax.experimental import pallas as pl
from jax.experimental.pallas import tpu as pltpu


# ----------------------------------------------------------------------------
# One-time probe of the rotate convention behind pltpu.roll (documented to match
# jnp.roll).  Pinning the sign here keeps the 3x3 tap shifts correct regardless
# of the hardware rotate direction.
# ----------------------------------------------------------------------------
@functools.lru_cache(maxsize=None)
def _roll_sign() -> int:
    def probe(x_ref, o_ref):
        o_ref[...] = pltpu.roll(x_ref[...], 3, 1)

    x = jnp.arange(8 * 128, dtype=jnp.float32).reshape(8, 128)
    y = pl.pallas_call(probe, out_shape=jax.ShapeDtypeStruct((8, 128), jnp.float32))(x)
    return 1 if bool(jnp.array_equal(y, jnp.roll(x, 3, axis=1))) else -1


def _vmem_ceiling_bytes() -> int:
    """Generation-aware VMEM ceiling (~3/4 of physical), conservative fallback."""
    try:
        cap = int(getattr(pltpu.get_tpu_info(), "vmem_capacity_bytes", 0) or 0)
    except Exception:
        cap = 0
    if cap <= 0:
        cap = 64 * 2 ** 20          # conservative (v7x-sized) fallback
    return max((cap * 3) // 4, 16 * 2 ** 20)


def _pick_group(N: int, HW: int) -> int:
    """How many images to pack into one grid step's lane axis (lane density)."""
    if HW % 128 == 0 and HW >= 256:
        return 1
    # Prefer the smallest divisor of N that makes the lane axis a dense multiple of 128.
    for g in range(1, N + 1):
        if N % g == 0 and (g * HW) % 128 == 0 and g * HW >= 256:
            return g
    # Fallback: largest divisor keeping the lane axis modest.
    best = 1
    for g in range(1, N + 1):
        if N % g == 0 and g * HW <= 4096:
            best = g
    return best


# ----------------------------------------------------------------------------
# Fused kernel: one (group of) image(s) per grid step.
#   x_ref   : (1, Cin, L) f32                 o_ref : (1, Cout, L) f32
#   s1/bb1  : (Cin, 1)  folded BN1
#   w1      : (Cm, Cin)  1x1 weight with BN2 scale folded in
#   b1      : (Cm, 1)    folded conv1-bias + BN2 bias
#   w2      : (9*Cout, Cm)  tap-stacked (rows k*Cout:(k+1)*Cout = tap k = ky*3+kx)
#   cb2     : (Cout, 1)
#   mask    : (9, L) f32   per-tap zero-padding validity (precomputed on host)
# ----------------------------------------------------------------------------
def _composite_kernel(x_ref, s1_ref, bb1_ref, w1_ref, b1_ref, w2_ref, cb2_ref,
                      mask_ref, o_ref, *, W, roll_sign):
    L = x_ref.shape[2]
    Cout = o_ref.shape[1]
    mxu_dtype = w1_ref.dtype                       # f32 or bf16 (f32 accumulation either way)

    # ---- BN1 -> ReLU (VPU, f32); cast fused at production for the MXU operand ----
    xn = jnp.maximum(x_ref[0] * s1_ref[...] + bb1_ref[...], 0.0).astype(mxu_dtype)  # (Cin, L)

    # ---- 1x1 conv (MXU) with BN2 + conv1-bias folded into w1/b1; ReLU -------------
    h = jnp.dot(w1_ref[...], xn, preferred_element_type=jnp.float32)                # (Cm, L)
    h = jnp.maximum(h + b1_ref[...], 0.0).astype(mxu_dtype)                          # (Cm, L)

    # ---- 3x3 conv: one stacked MXU matmul, 9 XLU rolls + precomputed edge masks ---
    r = jnp.dot(w2_ref[...], h, preferred_element_type=jnp.float32)                  # (9*Cout, L)

    acc = jnp.broadcast_to(cb2_ref[...], (Cout, L))          # vreg accumulator; single store
    for k in range(9):                                       # static unroll: 9 taps
        oy, ox = k // 3 - 1, k % 3 - 1
        rk = r[k * Cout:(k + 1) * Cout, :]
        if oy == 0 and ox == 0:
            acc = acc + rk
        else:
            s_k = oy * W + ox                                # out[p] needs tap value at p + s_k
            shift = (-roll_sign * s_k) % L                   # static, non-negative
            rolled = pltpu.roll(rk, shift, 1)                # XLU lane rotation
            acc = acc + rolled * mask_ref[k:k + 1, :]        # zero-padding / cross-image mask
    o_ref[0] = acc


def _fold_bn(gamma, beta, mean, var, eps=1e-5):
    scale = gamma / jnp.sqrt(var + eps)
    return scale, beta - mean * scale


@functools.partial(jax.jit, static_argnames=("compute_dtype", "roll_sign", "vmem_ceiling"))
def _composite_function_impl(x_nchw, params, *, compute_dtype, roll_sign, vmem_ceiling):
    N, Cin, H, W = x_nchw.shape
    Cm = params["conv1_w"].shape[0]                  # 4 * out_fts
    Cout = params["conv2_w"].shape[0]                # out_fts
    HW = H * W

    g = _pick_group(N, HW)                           # images packed per grid step (lane density)
    Nb = N // g
    L = g * HW

    # --- fold BN running stats into per-channel scale/bias (eval-mode BN) ----------
    s1, bb1 = _fold_bn(params["bn1_g"], params["bn1_b"], params["bn1_m"], params["bn1_v"])
    s2, bb2 = _fold_bn(params["bn2_g"], params["bn2_b"], params["bn2_m"], params["bn2_v"])

    # --- fold conv1 bias + BN2 into the 1x1 weights (saves two (Cm, L) VPU passes) --
    w1f = (s2[:, None] * params["conv1_w"]).astype(compute_dtype)                 # (Cm, Cin)
    b1f = (s2 * params["conv1_b"] + bb2).reshape(Cm, 1)                           # (Cm, 1) f32
    w2s = jnp.transpose(params["conv2_w"], (2, 3, 0, 1)).reshape(
        9 * Cout, Cm).astype(compute_dtype)                                       # tap-stacked

    # --- per-tap zero-padding validity masks, precomputed on the host (9, L) --------
    ys = jnp.arange(H, dtype=jnp.int32)[:, None]
    xs = jnp.arange(W, dtype=jnp.int32)[None, :]
    mask_list = []
    for k in range(9):
        oy, ox = k // 3 - 1, k % 3 - 1
        m = ((ys + oy >= 0) & (ys + oy < H) & (xs + ox >= 0) & (xs + ox < W))
        mask_list.append(jnp.tile(m.reshape(-1), g))
    masks = jnp.stack(mask_list).astype(jnp.float32)                              # (9, L)

    # --- lane-pack g images per grid step (layout plumbing only) --------------------
    if g == 1:
        x3 = x_nchw.reshape(N, Cin, HW)
    else:
        x3 = x_nchw.reshape(Nb, g, Cin, HW).transpose(0, 2, 1, 3).reshape(Nb, Cin, L)

    # --- explicit VMEM budget: blocks (double-buffered) + resident weights + temps ---
    cb = jnp.dtype(compute_dtype).itemsize
    est = (2 * 4 * (Cin + Cout) * L                      # double-buffered in/out blocks (f32)
           + cb * (Cm * Cin + 9 * Cout * Cm)             # resident conv weights
           + 4 * (2 * Cin + Cm + Cout) + 4 * 9 * L       # resident BN params + boundary masks
           + cb * (Cin + Cm) * L                         # MXU-dtype operands (xn, h)
           + 4 * (Cm + 9 * Cout + 2 * Cout) * L)         # f32 temps: pre-cast h, r, acc/rolled
    vmem_limit = int(min(max(2 * est, 16 * 2 ** 20), vmem_ceiling))
    if vmem_limit < est + (2 << 20):                     # never clamp below the live footprint
        vmem_limit = int(est + (2 << 20))

    out3 = pl.pallas_call(
        functools.partial(_composite_kernel, W=W, roll_sign=roll_sign),
        out_shape=jax.ShapeDtypeStruct((Nb, Cout, L), jnp.float32),
        grid_spec=pltpu.PrefetchScalarGridSpec(
            num_scalar_prefetch=0,
            grid=(Nb,),                                                # one image-group per step
            in_specs=[
                pl.BlockSpec((1, Cin, L), lambda n: (n, 0, 0)),        # per-group activations
                pl.BlockSpec((Cin, 1), lambda n: (0, 0)),              # BN1 scale (VMEM-resident)
                pl.BlockSpec((Cin, 1), lambda n: (0, 0)),              # BN1 bias
                pl.BlockSpec((Cm, Cin), lambda n: (0, 0)),             # conv1 weight (BN2 folded)
                pl.BlockSpec((Cm, 1), lambda n: (0, 0)),               # folded conv1+BN2 bias
                pl.BlockSpec((9 * Cout, Cm), lambda n: (0, 0)),        # conv2 weight (tap-stacked)
                pl.BlockSpec((Cout, 1), lambda n: (0, 0)),             # conv2 bias
                pl.BlockSpec((9, L), lambda n: (0, 0)),                # tap validity masks
            ],
            out_specs=pl.BlockSpec((1, Cout, L), lambda n: (n, 0, 0)),
        ),
        compiler_params=pltpu.CompilerParams(
            dimension_semantics=("parallel",),                         # megacore: groups across TCs
            vmem_limit_bytes=vmem_limit,
        ),
    )(x3, s1.reshape(Cin, 1), bb1.reshape(Cin, 1), w1f, b1f, w2s,
      params["conv2_b"].reshape(Cout, 1), masks)

    if g == 1:
        return out3.reshape(N, Cout, H, W)
    return out3.reshape(Nb, Cout, g, HW).transpose(0, 2, 1, 3).reshape(N, Cout, H, W)


def composite_function(x_nchw, params, *, compute_dtype=jnp.bfloat16):
    """x_nchw: (N, Cin, H, W) f32 -> (N, out_fts, H, W) f32 (NCHW, like the PyTorch module)."""
    return _composite_function_impl(x_nchw, params, compute_dtype=compute_dtype,
                                    roll_sign=_roll_sign(),
                                    vmem_ceiling=_vmem_ceiling_bytes())


# ----------------------------------------------------------------------------
# Synthetic parameters (torch layouts) + pure-JAX reference for the check.
# ----------------------------------------------------------------------------
def make_params(key, in_fts, out_fts):
    Cm = 4 * out_fts
    ks = jax.random.split(key, 12)
    return dict(
        bn1_g=1.0 + 0.1 * jax.random.normal(ks[0], (in_fts,), jnp.float32),
        bn1_b=0.1 * jax.random.normal(ks[1], (in_fts,), jnp.float32),
        bn1_m=0.05 * jax.random.normal(ks[2], (in_fts,), jnp.float32),
        bn1_v=jnp.abs(1.0 + 0.1 * jax.random.normal(ks[3], (in_fts,), jnp.float32)),
        conv1_w=0.1 * jax.random.normal(ks[4], (Cm, in_fts), jnp.float32),   # torch (Cm, Cin, 1, 1)
        conv1_b=0.05 * jax.random.normal(ks[5], (Cm,), jnp.float32),
        bn2_g=1.0 + 0.1 * jax.random.normal(ks[6], (Cm,), jnp.float32),
        bn2_b=0.1 * jax.random.normal(ks[7], (Cm,), jnp.float32),
        bn2_m=0.05 * jax.random.normal(ks[8], (Cm,), jnp.float32),
        bn2_v=jnp.abs(1.0 + 0.1 * jax.random.normal(ks[9], (Cm,), jnp.float32)),
        conv2_w=0.05 * jax.random.normal(ks[10], (out_fts, Cm, 3, 3), jnp.float32),  # torch OIHW
        conv2_b=0.05 * jax.random.normal(ks[11], (out_fts,), jnp.float32),
    )


def _reference(x_nchw, params, eps=1e-5):
    """Pure-JAX NCHW reference (eval-mode BN), mirrors the PyTorch module."""
    s1, bb1 = _fold_bn(params["bn1_g"], params["bn1_b"], params["bn1_m"], params["bn1_v"], eps)
    s2, bb2 = _fold_bn(params["bn2_g"], params["bn2_b"], params["bn2_m"], params["bn2_v"], eps)
    h = jnp.maximum(x_nchw * s1[None, :, None, None] + bb1[None, :, None, None], 0.0)
    y = jnp.einsum("nchw,dc->ndhw", h, params["conv1_w"]) + params["conv1_b"][None, :, None, None]
    h2 = jnp.maximum(y * s2[None, :, None, None] + bb2[None, :, None, None], 0.0)
    out = jax.lax.conv_general_dilated(
        h2, params["conv2_w"], window_strides=(1, 1), padding=((1, 1), (1, 1)),
        dimension_numbers=("NCHW", "OIHW", "NCHW"))
    return out + params["conv2_b"][None, :, None, None]


if __name__ == "__main__":
    key = jax.random.PRNGKey(0)

    # --- main check: N=2, Cin=4, out=8, 16x16 (HW=256, lane-dense, no packing) ------
    N, in_fts, out_fts, H, W = 2, 4, 8, 16, 16
    kx, kp, kx2, kp2 = jax.random.split(key, 4)
    x = jax.random.normal(kx, (N, in_fts, H, W), jnp.float32)
    params = make_params(kp, in_fts, out_fts)
    ref = _reference(x, params)

    out_f32 = jax.block_until_ready(composite_function(x, params, compute_dtype=jnp.float32))
    assert out_f32.shape == (N, out_fts, H, W), out_f32.shape
    err32 = float(jnp.max(jnp.abs(out_f32 - ref)))
    assert jnp.allclose(out_f32, ref, atol=5e-4, rtol=5e-4), err32

    out_bf16 = jax.block_until_ready(composite_function(x, params, compute_dtype=jnp.bfloat16))
    err16 = float(jnp.max(jnp.abs(out_bf16 - ref)))
    assert err16 < 5e-2, err16

    # --- packing-path check: small 8x8 maps (HW=64) -> 4 images packed per step ------
    N2, in2, out2, H2, W2 = 4, 6, 4, 8, 8
    x2 = jax.random.normal(kx2, (N2, in2, H2, W2), jnp.float32)
    params2 = make_params(kp2, in2, out2)
    ref2 = _reference(x2, params2)
    out2_f32 = jax.block_until_ready(composite_function(x2, params2, compute_dtype=jnp.float32))
    assert out2_f32.shape == (N2, out2, H2, W2), out2_f32.shape
    err2 = float(jnp.max(jnp.abs(out2_f32 - ref2)))
    assert jnp.allclose(out2_f32, ref2, atol=5e-4, rtol=5e-4), err2

    print("KERNEL_OK")
</pallas_src>

<mosaic_0001>
module attributes {stable_mosaic.version = 11 : i64} {
  func.func @probe(%arg0: memref<8x128xf32, #tpu.memory_space<vmem>>, %arg1: memref<8x128xf32, #tpu.memory_space<vmem>>) attributes {dimension_semantics = [], scalar_prefetch = 0 : i64, scratch_operands = 0 : i64, tpu.core_type = #tpu.core_type<tc>} {
    %c0 = arith.constant 0 : index
    %c0_0 = arith.constant 0 : index
    %0 = vector.load %arg0[%c0, %c0_0] : memref<8x128xf32, #tpu.memory_space<vmem>>, vector<8x128xf32>
    %c3_i32 = arith.constant 3 : i32
    %1 = tpu.dynamic_rotate %0 by %c3_i32 dim 1 : vector<8x128xf32>, i32 -> vector<8x128xf32>
    %c0_1 = arith.constant 0 : index
    %c0_2 = arith.constant 0 : index
    %2 = vector.load %arg1[%c0_1, %c0_2] : memref<8x128xf32, #tpu.memory_space<vmem>>, vector<8x128xf32>
    tpu.vector_store %arg1[%c0_1, %c0_2], %1 {strides = array<i32>} : memref<8x128xf32, #tpu.memory_space<vmem>>, vector<8x128xf32>,
    return
  }
}

</mosaic_0001>

<bundles_post_ra>
// kernel: tpu_custom_call.1
= control target key start
LH: loop header
LB: loop body
LE: loop exit
PB: predicated region body
PF: predicated region fallthrough
CT: control target
= control target key end

     0   :  { %6 = vsyncpa [#allocation3], 0  ;;  %s118_s0 = inlined_call_operand.hbm [shape: f32[8,128], index: 0, kind: input, shape index: {}]   ;;  %s119_s1 = inlined_call_operand.hbm [shape: f32[8,128], index: 1, kind: output, shape index: {}]  }
   0x1   :  { %7 = vsyncpa [#allocation4], 0  ;;  %s13_s8 = sshll.u32 %s118_s0, 4  ;;  %s99_s9 = smov [#allocation2]   ;;  %s14_s8 = int_to_ptr.hbm [resolvable:$true] %s13_s8 }
   0x2   :  { %s15_s10 = sshll.u32 %s99_s9, 4  ;;  %s16_s10 = int_to_ptr.vmem [resolvable:$true] %s15_s10 }
   0x3   :  { %18 = dma.hbm_to_vmem [thread:$0]  %s14_s8, 128, %s16_s10, [#allocation3]  }
   0x4   :  { %95 = dma.done.wait [#allocation3], 128  }
   0x5   :  { %96 = vsyncadd [#allocation3], 4294967168  ;;  %v23_v0 = vld [vmem:[#allocation2] sm:$0xff]  ;;  %s100_s11 = smov 3   ;;  %s101_s12 = smov [#allocation5]  }
   0x6   :  { %24 = vrot.lane.b32.xlu0 %v23_v0, %s100_s11  ;;  %s32_s13 = sshll.u32 %s101_s12, 4  ;;  %s34_s16 = sshll.u32 %s119_s1, 4  ;;  %s33_s13 = int_to_ptr.vmem [resolvable:$true] %s32_s13  ;;  %s35_s16 = int_to_ptr.hbm [resolvable:$true] %s34_s16 }
  0x78   :  { %v25_v1 = vpop.permute.xlu0 %24 }
  0x79   :  { %26 = vst [vmem:[#allocation5] sm:$0xff] %v25_v1 }
  0x7a   :  { %37 = dma.vmem_to_hbm [thread:$0]  %s33_s13, 128, %s35_s16, [#allocation4]  }
  0x7b   :  { %97 = dma.done.wait [#allocation4], 128  }
  0x7c   :  { %98 = vsyncadd [#allocation4], 4294967168 }
  0x7d   :  { %42 = vsyncpa [#allocation3], 1 }
  0x7e   :  { %43 = vsyncpa [#allocation4], 1 }

</bundles_post_ra>
